<compile_context>
chip_gen: v6e
topology: v6e:2x2x1
jax: 0.10.0
libtpu: 0.0.40
codegen_flags: <defaults>
</compile_context>

<pallas_src>
import jax
import jax.numpy as jnp
from jax import lax
from jax.experimental import pallas as pl
from jax.experimental.pallas import tpu as pltpu


def _gnn_hybrid_kernel(src_ref, dst_ref, xt_ref, w12t_ref, b12t_ref, o_ref):
    # src_ref : [1, E] int32   (source node of each edge)
    # dst_ref : [E, 1] int32   (destination node of each edge)
    # xt_ref  : [D_in, N] f32  (node features, transposed: nodes on lane axis)
    # w12t_ref: [3, D_in] f32  (folded weight, transposed)
    # b12t_ref: [3, 1]   f32   (folded bias)
    # o_ref   : [3, N]   f32   (transposed output, lane-dense)
    e = src_ref.shape[1]
    n = xt_ref.shape[1]

    # Folded projection first (3-wide), transposed layout:  t^T = W12^T @ x^T
    t_t = jnp.dot(w12t_ref[...], xt_ref[...],
                  preferred_element_type=jnp.float32)                 # [3, N]

    # One-hot edge operators built in-registers from the edge list
    # (replaces dense row-normalized adjacency + scatter-add):
    #   S^T[j, e] = 1 iff src[e] == j   -> gathers source-node features per edge
    #   D  [e, i] = 1 iff dst[e] == i   -> segment-sums messages onto destinations
    node_row = lax.broadcasted_iota(jnp.int32, (n, e), 0)
    s_t = (node_row == src_ref[...]).astype(jnp.float32)              # [N, E]
    node_col = lax.broadcasted_iota(jnp.int32, (e, n), 1)
    d = (node_col == dst_ref[...]).astype(jnp.float32)                # [E, N]

    # messages^T = t^T @ S^T : projected x_j gathered per edge
    msg_t = jnp.dot(t_t, s_t, preferred_element_type=jnp.float32)     # [3, E]
    # sums^T = messages^T @ D : sum over in-edges of each node
    sum_t = jnp.dot(msg_t, d, preferred_element_type=jnp.float32)     # [3, N]

    # mean aggregation; zero-in-degree nodes aggregate to 0 (PyG behavior)
    deg = jnp.sum(d, axis=0, keepdims=True)                           # [1, N]
    aggr_t = sum_t / jnp.maximum(deg, 1.0)

    o_ref[...] = (aggr_t + b12t_ref[...]).astype(o_ref.dtype)


def gnn_lstm_hybrid_forward_batched(x, edge_index, w_gnn, b_gnn, w_fc, b_fc):
    """Batched forward.

    x:          [B, N, D_in] float32
    edge_index: [B, 2, E] int32 (row 0 = source, row 1 = target)
    w_gnn: [H, D_in], b_gnn: [H], w_fc: [3, H], b_fc: [3]
    returns [B, N, 3]
    """
    bsz, n, d_in = x.shape
    e = edge_index.shape[-1]
    out_dim = w_fc.shape[0]  # 3

    # Fold the two Linear layers:  out = A @ (x @ W12) + b12
    w12t = jnp.dot(w_fc, w_gnn).astype(jnp.float32)                   # [3, D_in]
    b12t = (jnp.dot(w_fc, b_gnn) + b_fc).reshape(out_dim, 1)          # [3, 1]
    b12t = b12t.astype(jnp.float32)

    # Layout plumbing: node index on the lane (last) axis -> lane-dense stores.
    xt = jnp.swapaxes(x, -1, -2).astype(jnp.float32)                  # [B, D_in, N]
    src = edge_index[:, 0, :].reshape(bsz, 1, e).astype(jnp.int32)    # [B, 1, E]
    dst = edge_index[:, 1, :].reshape(bsz, e, 1).astype(jnp.int32)    # [B, E, 1]

    out_t = pl.pallas_call(
        _gnn_hybrid_kernel,
        out_shape=jax.ShapeDtypeStruct((bsz, out_dim, n), jnp.float32),
        grid=(bsz,),
        in_specs=[
            pl.BlockSpec((None, 1, e), lambda g: (g, 0, 0)),          # src
            pl.BlockSpec((None, e, 1), lambda g: (g, 0, 0)),          # dst
            pl.BlockSpec((None, d_in, n), lambda g: (g, 0, 0)),       # x^T
            pl.BlockSpec((out_dim, d_in), lambda g: (0, 0)),          # W12^T (shared)
            pl.BlockSpec((out_dim, 1), lambda g: (0, 0)),             # b12^T (shared)
        ],
        out_specs=pl.BlockSpec((None, out_dim, n), lambda g: (g, 0, 0)),
        compiler_params=pltpu.CompilerParams(
            dimension_semantics=("parallel",),
            vmem_limit_bytes=32 * 1024 * 1024,
        ),
    )(src, dst, xt, w12t, b12t)

    return jnp.swapaxes(out_t, -1, -2)                                # [B, N, 3]


def gnn_lstm_hybrid_forward(x, edge_index, w_gnn, b_gnn, w_fc, b_fc):
    """Single-graph forward matching the PyTorch module: x [N, D_in], edge_index [2, E]."""
    out = gnn_lstm_hybrid_forward_batched(
        x[None], edge_index[None], w_gnn, b_gnn, w_fc, b_fc)
    return out[0]


def _reference(x, edge_index, w_gnn, b_gnn, w_fc, b_fc):
    n = x.shape[0]
    src, dst = edge_index[0], edge_index[1]
    adj = jnp.zeros((n, n), jnp.float32).at[dst, src].add(1.0)
    deg = jnp.sum(adj, axis=1, keepdims=True)
    aggr = (adj / jnp.maximum(deg, 1.0)) @ x
    h = aggr @ w_gnn.T + b_gnn
    return h @ w_fc.T + b_fc


if __name__ == "__main__":
    key = jax.random.PRNGKey(0)

    num_graphs = 4          # graphs batched into one pallas_call (parallel grid axis)
    num_centers = 16        # graph nodes
    lstm_output_dim = 32    # in_channels of GNNLayer
    gnn_hidden_dim = 32
    num_edges = 48

    keys = jax.random.split(key, 7)

    x = jax.random.normal(
        keys[0], (num_graphs, num_centers, lstm_output_dim), jnp.float32)
    src = jax.random.randint(keys[1], (num_graphs, num_edges), 0, num_centers)
    dst = jax.random.randint(keys[2], (num_graphs, num_edges), 0, num_centers)
    edge_index = jnp.stack([src, dst], axis=1).astype(jnp.int32)      # [B, 2, E]

    # nn.Linear shapes: weight [out, in], bias [out].
    w_gnn = jax.random.normal(keys[3], (gnn_hidden_dim, lstm_output_dim), jnp.float32) * 0.1
    b_gnn = jax.random.normal(keys[4], (gnn_hidden_dim,), jnp.float32) * 0.1
    w_fc = jax.random.normal(keys[5], (3, gnn_hidden_dim), jnp.float32) * 0.1
    b_fc = jax.random.normal(keys[6], (3,), jnp.float32) * 0.1

    # Batched path (all graphs in one kernel launch).
    out_b = gnn_lstm_hybrid_forward_batched(x, edge_index, w_gnn, b_gnn, w_fc, b_fc)
    out_b = jax.block_until_ready(out_b)
    assert out_b.shape == (num_graphs, num_centers, 3)
    for g in range(num_graphs):
        ref = _reference(x[g], edge_index[g], w_gnn, b_gnn, w_fc, b_fc)
        assert jnp.allclose(out_b[g], ref, atol=1e-4, rtol=1e-4), f"graph {g} mismatch"

    # Single-graph path matching the module signature.
    out_s = gnn_lstm_hybrid_forward(x[0], edge_index[0], w_gnn, b_gnn, w_fc, b_fc)
    out_s = jax.block_until_ready(out_s)
    assert out_s.shape == (num_centers, 3)
    assert jnp.allclose(
        out_s, _reference(x[0], edge_index[0], w_gnn, b_gnn, w_fc, b_fc),
        atol=1e-4, rtol=1e-4)

    print("KERNEL_OK")
</pallas_src>

<mosaic_0001>
module attributes {stable_mosaic.version = 11 : i64} {
  func.func @_gnn_hybrid_kernel(%arg0: i32, %arg1: memref<1x1x48xi32, #tpu.memory_space<vmem>>, %arg2: memref<1x48x1xi32, #tpu.memory_space<vmem>>, %arg3: memref<1x32x16xf32, #tpu.memory_space<vmem>>, %arg4: memref<3x32xf32, #tpu.memory_space<vmem>>, %arg5: memref<3x1xf32, #tpu.memory_space<vmem>>, %arg6: memref<1x3x16xf32, #tpu.memory_space<vmem>>) attributes {dimension_semantics = [#tpu.dimension_semantics<parallel>], iteration_bounds = array<i64: 4>, scalar_prefetch = 0 : i64, scratch_operands = 0 : i64, tpu.core_type = #tpu.core_type<tc>, window_params = [{transform_indices = @transform_0, window_bounds = array<i64: 1, 1, 48>}, {transform_indices = @transform_1, window_bounds = array<i64: 1, 48, 1>}, {transform_indices = @transform_2, window_bounds = array<i64: 1, 32, 16>}, {pipeline_mode = #tpu.pipeline_mode<synchronous>, transform_indices = @transform_3, window_bounds = array<i64: 3, 32>}, {pipeline_mode = #tpu.pipeline_mode<synchronous>, transform_indices = @transform_4, window_bounds = array<i64: 3, 1>}, {transform_indices = @transform_5, window_bounds = array<i64: 1, 3, 16>}]} {
    %c0 = arith.constant 0 : index
    %c0_0 = arith.constant 0 : index
    %0 = vector.load %arg4[%c0, %c0_0] : memref<3x32xf32, #tpu.memory_space<vmem>>, vector<3x32xf32>
    %c0_1 = arith.constant 0 : index
    %c0_2 = arith.constant 0 : index
    %c0_3 = arith.constant 0 : index
    %1 = vector.load %arg3[%c0_1, %c0_2, %c0_3] : memref<1x32x16xf32, #tpu.memory_space<vmem>>, vector<1x32x16xf32>
    %2 = vector.shape_cast %1 : vector<1x32x16xf32> to vector<32x16xf32>
    %cst = arith.constant dense<0.000000e+00> : vector<3x16xf32>
    %3 = tpu.matmul %0, %2, %cst {dimension_numbers = #tpu.dot_dimension_numbers<[1], [0], [0], [1], [0, 0, 1, 1], [], []>} : vector<3x32xf32>, vector<32x16xf32>, vector<3x16xf32> -> vector<3x16xf32>
    %4 = tpu.iota {dimensions = array<i32: 0>} : vector<16x48xi32>
    %c0_4 = arith.constant 0 : index
    %c0_5 = arith.constant 0 : index
    %c0_6 = arith.constant 0 : index
    %5 = vector.load %arg1[%c0_4, %c0_5, %c0_6] : memref<1x1x48xi32, #tpu.memory_space<vmem>>, vector<1x1x48xi32>
    %6 = vector.shape_cast %5 : vector<1x1x48xi32> to vector<1x48xi32>
    %7 = vector.broadcast %6 : vector<1x48xi32> to vector<16x48xi32>
    %8 = arith.cmpi eq, %4, %7 : vector<16x48xi32>
    %9 = arith.extui %8 : vector<16x48xi1> to vector<16x48xi32>
    %10 = arith.sitofp %9 : vector<16x48xi32> to vector<16x48xf32>
    %11 = tpu.iota {dimensions = array<i32: 1>} : vector<48x16xi32>
    %c0_7 = arith.constant 0 : index
    %c0_8 = arith.constant 0 : index
    %c0_9 = arith.constant 0 : index
    %12 = vector.load %arg2[%c0_7, %c0_8, %c0_9] : memref<1x48x1xi32, #tpu.memory_space<vmem>>, vector<1x48x1xi32>
    %13 = vector.shape_cast %12 : vector<1x48x1xi32> to vector<48x1xi32>
    %14 = vector.broadcast %13 : vector<48x1xi32> to vector<48x16xi32>
    %15 = arith.cmpi eq, %11, %14 : vector<48x16xi32>
    %16 = arith.extui %15 : vector<48x16xi1> to vector<48x16xi32>
    %17 = arith.sitofp %16 : vector<48x16xi32> to vector<48x16xf32>
    %cst_10 = arith.constant dense<0.000000e+00> : vector<3x48xf32>
    %18 = tpu.matmul %3, %10, %cst_10 {dimension_numbers = #tpu.dot_dimension_numbers<[1], [0], [0], [1], [0, 0, 1, 1], [], []>} : vector<3x16xf32>, vector<16x48xf32>, vector<3x48xf32> -> vector<3x48xf32>
    %cst_11 = arith.constant dense<0.000000e+00> : vector<3x16xf32>
    %19 = tpu.matmul %18, %17, %cst_11 {dimension_numbers = #tpu.dot_dimension_numbers<[1], [0], [0], [1], [0, 0, 1, 1], [], []>} : vector<3x48xf32>, vector<48x16xf32>, vector<3x16xf32> -> vector<3x16xf32>
    %cst_12 = arith.constant dense<0.000000e+00> : vector<16xf32>
    %20 = vector.multi_reduction <add>, %17, %cst_12 [0] : vector<48x16xf32> to vector<16xf32>
    %21 = vector.shape_cast %20 : vector<16xf32> to vector<1x16xf32>
    %cst_13 = arith.constant 1.000000e+00 : f32
    %22 = vector.broadcast %cst_13 : f32 to vector<1x16xf32>
    %23 = arith.maximumf %21, %22 : vector<1x16xf32>
    %24 = vector.broadcast %23 : vector<1x16xf32> to vector<3x16xf32>
    %25 = arith.divf %19, %24 : vector<3x16xf32>
    %c0_14 = arith.constant 0 : index
    %c0_15 = arith.constant 0 : index
    %26 = vector.load %arg5[%c0_14, %c0_15] : memref<3x1xf32, #tpu.memory_space<vmem>>, vector<3x1xf32>
    %27 = vector.broadcast %26 : vector<3x1xf32> to vector<3x16xf32>
    %28 = arith.addf %25, %27 : vector<3x16xf32>
    %c0_16 = arith.constant 0 : index
    %c0_17 = arith.constant 0 : index
    %c0_18 = arith.constant 0 : index
    %29 = vector.load %arg6[%c0_16, %c0_17, %c0_18] : memref<1x3x16xf32, #tpu.memory_space<vmem>>, vector<1x3x16xf32>
    %30 = vector.shape_cast %29 : vector<1x3x16xf32> to vector<3x16xf32>
    %31 = vector.shape_cast %28 : vector<3x16xf32> to vector<1x3x16xf32>
    tpu.vector_store %arg6[%c0_16, %c0_17, %c0_18], %31 {strides = array<i32>} : memref<1x3x16xf32, #tpu.memory_space<vmem>>, vector<1x3x16xf32>,
    return
  }
  func.func @transform_0(%arg0: i32) -> (i32, i32, i32) {
    %c0_i32 = arith.constant 0 : i32
    %c0_i32_0 = arith.constant 0 : i32
    %c0_i32_1 = arith.constant 0 : i32
    return %arg0, %c0_i32, %c0_i32_0 : i32, i32, i32
  }
  func.func @transform_1(%arg0: i32) -> (i32, i32, i32) {
    %c0_i32 = arith.constant 0 : i32
    %c0_i32_0 = arith.constant 0 : i32
    %c0_i32_1 = arith.constant 0 : i32
    return %arg0, %c0_i32, %c0_i32_0 : i32, i32, i32
  }
  func.func @transform_2(%arg0: i32) -> (i32, i32, i32) {
    %c0_i32 = arith.constant 0 : i32
    %c0_i32_0 = arith.constant 0 : i32
    %c0_i32_1 = arith.constant 0 : i32
    return %arg0, %c0_i32, %c0_i32_0 : i32, i32, i32
  }
  func.func @transform_3(%arg0: i32) -> (i32, i32) {
    %c0_i32 = arith.constant 0 : i32
    %c0_i32_0 = arith.constant 0 : i32
    %c0_i32_1 = arith.constant 0 : i32
    return %c0_i32, %c0_i32_0 : i32, i32
  }
  func.func @transform_4(%arg0: i32) -> (i32, i32) {
    %c0_i32 = arith.constant 0 : i32
    %c0_i32_0 = arith.constant 0 : i32
    %c0_i32_1 = arith.constant 0 : i32
    return %c0_i32, %c0_i32_0 : i32, i32
  }
  func.func @transform_5(%arg0: i32) -> (i32, i32, i32) {
    %c0_i32 = arith.constant 0 : i32
    %c0_i32_0 = arith.constant 0 : i32
    %c0_i32_1 = arith.constant 0 : i32
    return %arg0, %c0_i32, %c0_i32_0 : i32, i32, i32
  }
}

</mosaic_0001>

<bundles_post_ra>
// kernel: tpu_custom_call.1
= control target key start
LH: loop header
LB: loop body
LE: loop exit
PB: predicated region body
PF: predicated region fallthrough
CT: control target
= control target key end

     0   :  { %s784_s18 = smov 0   ;;  %s860_s0 = inlined_call_operand.vmem [shape: s32[4,1,48], index: 0, kind: input, shape index: {}]   ;;  %s861_s1 = inlined_call_operand.vmem [shape: s32[4,48,1], index: 1, kind: input, shape index: {}]   ;;  %s862_s2 = inlined_call_operand.vmem [shape: f32[4,32,16], index: 2, kind: input, shape index: {}]   ;;  %s863_s3 = inlined_call_operand.vmem [shape: f32[3,32], index: 3, kind: input, shape index: {}]   ;;  %s864_s4 = inlined_call_operand.vmem [shape: f32[3,1], index: 4, kind: input, shape index: {}]   ;;  %s865_s5 = inlined_call_operand.vmem [shape: f32[4,3,16], index: 5, kind: output, shape index: {}]  }
   0x1 LB: > { %s645_s19 = sadd.s32 4294967295, %s748_s18   ;;  %p649_p0 = scmp.ge.s32.totalorder %s748_s18, 1  ;;  %s748_s18 = sphi %s784_s18, %s15_s18  }
   0x2   : > { %p205_p1 = scmp.lt.s32.totalorder %s748_s18, 5 }
   0x4   : > { %p206_p2 = pnand %p649_p0, %p205_p1 }
   0x5   : > { %p240_p3 = scmp.lt.s32.totalorder (!%p206_p2), %s645_s19, 3 }
   0x6   : > { %209 = sbr.rel (%p206_p2) target bundleno = 606 (0x25e), region = 40 }
   0xb   : > { %v336_v0 = vlaneseq  ;;  %v750_v1 = vmov 0.0   ;;  %vm751_vm0 = vmmov 0   ;;  %s867_s19 = smov (!%p240_p3, %s645_s19), 3  ;;  %v257_v9 = vld [vmem:[%s863_s3] sm:$0x7]  ;;  %vm262_vm1 = vcmask 261120  }
   0xc   : > { %692 = vmatprep.subr.mxu0 %v750_v1  ;;  %700 = vmatprep.mubr.msk.f32.mxu0 %vm751_vm0, %v750_v1  ;;  %s676_s20 = sshll.u32 %s867_s19, 5  ;;  %s242_s26 = scalar_lea.vmem %s860_s0, %s867_s19  ;;  %v752_v10 = vmov 1.0   ;;  %v753_v11 = vmov 0   ;;  %v562_v18 = vld [vmem:[%s864_s4] sm:$0x7]  ;;  %vm394_vm4 = vcmask 130048  }
   0xd   : > { %710 = vmatprep.subr.mxu1 %v750_v1  ;;  %722 = vmatprep.mubr.msk.f32.mxu1 %vm751_vm0, %v750_v1  ;;  %v337_v2 = vshrl.u32 %v336_v0, 7  ;;  %s252_s23 = scalar_lea.vmem %s862_s2, %s676_s20  ;;  %v655_v7 = vld [vmem:[%s242_s26] ss:$0 sm:$0xff]  ;;  %s725_s29 = smul.u32 48, %s867_s19  ;;  %v351_v19 = vand.u32 127, %v336_v0  ;;  %vm468_vm11 = vcmask 392192  }
   0xe   : > { %v261_v3 = vld [vmem:[%s252_s23 + $0x18] sm:$0xff]  ;;  %v260_v4 = vld [vmem:[%s252_s23 + $0x10] sm:$0xff]  ;;  %v259_v5 = vld [vmem:[%s252_s23 + $0x8] sm:$0xff]  ;;  %739 = vset.pattern.permute.xlu1 %v753_v11  ;;  %738 = vset.pattern.permute.xlu0 %v753_v11  ;;  %s653_s10 = sshll.u32 %s867_s19, 2  ;;  %vm569_vm12 = vcmask 124928  }
   0xf   : > { %693 = vmatpush3.msra.mxu0 %v261_v3  ;;  %v338_v6 = vadd.s32 8, %v337_v2  ;;  %v258_v8 = vld [vmem:[%s252_s23] sm:$0xff]  ;;  %vm344_vm3 = vcmp.eq.s32.totalorder %v337_v2, %v655_v7  ;;  %s247_s7 = scalar_lea.vmem %s861_s1, %s725_s29  ;;  %s256_s13 = scalar_lea.vmem %s865_s5, %s653_s10 }
  0x10   : > { %694 = vmatprep.subr.mxu0 %v750_v1  ;;  %v357_v12 = vld [vmem:[%s247_s7 + $0x28] sm:$0xff]  ;;  %v355_v13 = vld [vmem:[%s247_s7 + $0x18] sm:$0xff]  ;;  %v356_v14 = vld [vmem:[%s247_s7 + $0x20] sm:$0xff] }
  0x11   : > { %695 = vmatpush3.msra.mxu0 %v260_v4  ;;  %vm345_vm2 = vcmp.eq.s32.totalorder %v338_v6, %v655_v7  ;;  %374 = vperm.xlu0 %738, %v357_v12   ;;  %v354_v15 = vld [vmem:[%s247_s7 + $0x10] sm:$0xff]  ;;  %v353_v16 = vld [vmem:[%s247_s7 + $0x8] sm:$0xff]  ;;  %v352_v17 = vld [vmem:[%s247_s7] sm:$0xff] }
  0x12   : > { %696 = vmatprep.subr.mxu0 %v750_v1  ;;  %368 = vperm.xlu1 %739, %v355_v13  }
  0x13   : > { %697 = vmatpush3.msra.mxu0 %v259_v5 }
  0x14   : > { %698 = vmatprep.subr.mxu0 %v750_v1 }
  0x15   : > { %699 = vmatpush3.msra.mxu0 %v258_v8  ;;  %371 = vperm.xlu0 %738, %v356_v14  }
  0x16   : > { %701 = vmatmul.mubr.msk.f32.vlgmr.msra.gmra.mxu0 %vm262_vm1, %v257_v9  ;;  %703 = vmatprep.subr.mxu0 %v750_v1 }
  0x17   : > { %704 = vmatpush3.msk.msra.mxu0 %vm345_vm2, %v752_v10  ;;  %707 = vmatprep.mubr.msk.f32.mxu0 %vm751_vm0, %v750_v1 }
  0x18   : > { %705 = vmatprep.subr.mxu0 %v750_v1  ;;  %365 = vperm.xlu1 %739, %v354_v15  }
  0x19   : > { %706 = vmatpush3.msk.msra.mxu0 %vm344_vm3, %v752_v10  ;;  %362 = vperm.xlu0 %738, %v353_v16  }
  0x1c   : > { %359 = vperm.xlu1 %739, %v352_v17  }
  0x1d   : > { %565 = vperm.xlu0 %738, %v562_v18  }
  0x8c   : > { %v375_v21 = vpop.permute.xlu0 %374 }
  0x8d   : > { %v369_v22 = vpop.permute.xlu1 %368  ;;  %vm381_vm5 = vcmp.eq.s32.totalorder %v351_v19, %v375_v21 }
  0x8e   : > { %vm379_vm6 = vcmp.eq.s32.totalorder %v351_v19, %v369_v22  ;;  %v663_v24 = vsel %vm381_vm5, 1.0, %v750_v1  ;;  %711 = vmatpush3.msk.msra.mxu1 %vm381_vm5, %v752_v10 }
  0x8f   : > { %v661_v25 = vsel %vm379_vm6, 1.0, %v750_v1  ;;  %v551_v26 = vsel %vm394_vm4, %v663_v24, 0.0  ;;  %712 = vmatprep.subr.mxu1 %v750_v1 }
  0x90   : > { %v547_v27 = vsel %vm394_vm4, %v661_v25, 0.0  ;;  %v372_v28 = vpop.permute.xlu0 %371 }
  0x91   : > { %vm380_vm7 = vcmp.eq.s32.totalorder %v351_v19, %v372_v28 }
  0x92   : > { %v662_v30 = vsel %vm380_vm7, 1.0, %v750_v1  ;;  %713 = vmatpush3.msk.msra.mxu1 %vm380_vm7, %v752_v10 }
  0x93   : > { %v366_v29 = vpop.permute.xlu1 %365  ;;  %v549_v32 = vsel %vm394_vm4, %v662_v30, 0.0  ;;  %714 = vmatprep.subr.mxu1 %v750_v1 }
  0x94   : > { %vm378_vm8 = vcmp.eq.s32.totalorder %v351_v19, %v366_v29  ;;  %v363_v34 = vpop.permute.xlu0 %362  ;;  %715 = vmatpush3.msk.msra.mxu1 %vm379_vm6, %v752_v10 }
  0x95   : > { %v660_v31 = vsel %vm378_vm8, 1.0, %v750_v1  ;;  %vm377_vm9 = vcmp.eq.s32.totalorder %v351_v19, %v363_v34  ;;  %716 = vmatprep.subr.mxu1 %v750_v1 }
  0x96   : > { %v545_v33 = vsel %vm394_vm4, %v660_v31, 0.0  ;;  %v659_v36 = vsel %vm377_vm9, 1.0, %v750_v1  ;;  %717 = vmatpush3.msk.msra.mxu1 %vm378_vm8, %v752_v10 }
  0x97   : > { %v360_v35 = vpop.permute.xlu1 %359  ;;  %v543_v38 = vsel %vm394_vm4, %v659_v36, 0.0  ;;  %718 = vmatprep.subr.mxu1 %v750_v1 }
  0x98   : > { %vm376_vm10 = vcmp.eq.s32.totalorder %v351_v19, %v360_v35  ;;  %719 = vmatpush3.msk.msra.mxu1 %vm377_vm9, %v752_v10  ;;  %v566_v57 = vpop.permute.xlu0 %565 }
  0x99   : > { %v658_v37 = vsel %vm376_vm10, 1.0, %v750_v1  ;;  %720 = vmatprep.subr.mxu1 %v750_v1 }
  0x9a   : > { %v542_v39 = vsel %vm394_vm4, %v658_v37, 0.0  ;;  %721 = vmatpush3.msk.msra.mxu1 %vm376_vm10, %v752_v10 }
  0x9b   : > { %v544_v40 = vadd.f32 %v543_v38, %v542_v39 }
  0x9d   : > { %v546_v41 = vadd.f32 %v545_v33, %v544_v40 }
  0x9f   : > { %v548_v42 = vadd.f32 %v547_v27, %v546_v41 }
  0xa1   : > { %v550_v43 = vadd.f32 %v549_v32, %v548_v42 }
  0xa3   : > { %v552_v44 = vadd.f32 %v551_v26, %v550_v43 }
  0xa5   : > { %v553_v47 = vrot.slane %v552_v44, 4 }
  0xa7   : > { %v554_v48 = vadd.f32 %v553_v47, %v552_v44 }
  0xa9   : > { %v555_v49 = vrot.slane %v554_v48, 2 }
  0xab   : > { %v556_v50 = vadd.f32 %v555_v49, %v554_v48 }
  0xad   : > { %v557_v51 = vrot.slane %v556_v50, 1 }
  0xaf   : > { %v558_v52 = vadd.f32 %v557_v51, %v556_v50 }
  0xb1   : > { %v559_v53 = vmax.f32 %v558_v52, 1.0 }
  0xb3   : > { %740 = vrcp.f32 %v559_v53 }
  0xc0   : > { %v741_v54 = vpop.eup %740 }
  0xd6   : > { %v332_v20 = vpop.f32.mrf.mxu0 }
  0xd7   : > { %708 = vmatmul.mubr.msk.f32.vlgmr.msra.gmra.mxu0 %vm394_vm4, %v332_v20 }
  0xd8   : > { %v702_v23 = vpop.f32.mrf.mxu0 }
 0x197   : > { %v464_v45 = vpop.f32.mrf.mxu0 }
 0x198   : > { %723 = vmatmul.mubr.msk.f32.vlgmr.msra.gmra.mxu1 %vm468_vm11, %v464_v45 }
 0x199   : > { %v709_v46 = vpop.f32.mrf.mxu0 }
 0x258   : > { %v538_v55 = vpop.f32.mrf.mxu1 }
 0x259   : > { %v561_v56 = vmul.f32 %v741_v54, %v538_v55 }
 0x25a   : > { %v724_v58 = vpop.f32.mrf.mxu1 }
 0x25b   : > { %v568_v59 = vadd.f32 %v566_v57, %v561_v56 }
 0x25d   : > { %570 = vst.msk [vmem:[%s256_s13] sm:$0x7] %vm569_vm12, %v568_v59 }
 0x25e PF: > { %s15_s18 = sadd.s32 1, %s748_s18  }
 0x25f   : > { %p12_p4 = scmp.ge.s32.totalorder %s15_s18, 6  }
 0x261   :  { %14 = sbr.rel (!%p12_p4) target bundleno = 1 (0x1), region = 76 }

</bundles_post_ra>
